<compile_context>
chip_gen: v7x
topology: tpu7x:2x2x1
jax: 0.10.0
libtpu: 0.0.40
codegen_flags: <defaults>
</compile_context>

<pallas_src>
import functools
import math

import jax
import jax.numpy as jnp
from jax.experimental import pallas as pl
from jax.experimental.pallas import tpu as pltpu


# Matmul operand dtype for the MXU (accumulation is always f32).
_MXU_DTYPE = jnp.bfloat16


# ----------------------------------------------------------------------------- helpers
def _gelu(x):
    # tanh-approximation GELU (== jax.nn.gelu(approximate=True)); tanh -> EUP slot.
    # TODO(synk): HF "gelu" is the exact erf form; tanh approx differs by <~1e-3.
    c = 0.7978845608028654  # sqrt(2/pi)
    return 0.5 * x * (1.0 + jnp.tanh(c * (x + 0.044715 * x * x * x)))


def _largest_divisor_leq(n, cap):
    cap = max(1, min(cap, n))
    for d in range(cap, 0, -1):
        if n % d == 0:
            return d
    return n


# ----------------------------------------------------------------------------- kernels
def _dense_kernel(x_ref, w_ref, b_ref, o_ref, *, activation):
    x = x_ref[...].astype(_MXU_DTYPE)
    w = w_ref[...].astype(_MXU_DTYPE)
    y = jnp.dot(x, w, preferred_element_type=jnp.float32) + b_ref[...]
    if activation == "gelu":
        y = _gelu(y)
    o_ref[...] = y


def _dense_res_ln_kernel(x_ref, res_ref, w_ref, b_ref, g_ref, beta_ref, o_ref, *, eps):
    # y = x @ W + b + residual, then LayerNorm over the (full) last dim.
    x = x_ref[...].astype(_MXU_DTYPE)
    w = w_ref[...].astype(_MXU_DTYPE)
    y = jnp.dot(x, w, preferred_element_type=jnp.float32) + b_ref[...] + res_ref[...]
    mu = jnp.mean(y, axis=-1, keepdims=True)
    var = jnp.mean((y - mu) ** 2, axis=-1, keepdims=True)
    o_ref[...] = (y - mu) * jax.lax.rsqrt(var + eps) * g_ref[...] + beta_ref[...]


def _ln_kernel(x_ref, g_ref, b_ref, o_ref, *, eps):
    x = x_ref[...]
    mu = jnp.mean(x, axis=-1, keepdims=True)
    var = jnp.mean((x - mu) ** 2, axis=-1, keepdims=True)
    o_ref[...] = (x - mu) * jax.lax.rsqrt(var + eps) * g_ref[...] + b_ref[...]


def _attn_kernel(qkv_ref, m_ref, o_ref, *, num_heads, scale):
    # One grid step = one batch element, all heads (head split done in VMEM; no
    # XLA-side transposes / no per-head HBM round trips).
    qkv = qkv_ref[0]                      # (S, 3H) f32
    bias = m_ref[...]                     # (1, S) additive mask bias (key positions)
    H = qkv.shape[-1] // 3
    d = H // num_heads
    for h in range(num_heads):            # static unrolled loop over heads
        q = qkv[:, h * d:(h + 1) * d].astype(_MXU_DTYPE)
        k = qkv[:, H + h * d:H + (h + 1) * d].astype(_MXU_DTYPE)
        v = qkv[:, 2 * H + h * d:2 * H + (h + 1) * d].astype(_MXU_DTYPE)
        # q @ k^T without an explicit transpose: contract the last dims directly.
        s = jax.lax.dot_general(q, k, (((1,), (1,)), ((), ())),
                                preferred_element_type=jnp.float32)          # (S, S)
        s = s * scale + bias
        s = s - jnp.max(s, axis=-1, keepdims=True)
        p = jnp.exp(s)
        denom = jnp.sum(p, axis=-1, keepdims=True)
        ctx = jnp.dot(p.astype(_MXU_DTYPE), v,
                      preferred_element_type=jnp.float32)                    # (S, d)
        o_ref[0, :, h * d:(h + 1) * d] = ctx * pl.reciprocal(denom, approx=True)


def _pool_proj_kernel(hs_ref, mask_ref, w_ref, bias_ref, g_ref, beta_ref, o_ref,
                      cls_acc, sum_acc, cnt_acc, *, eps):
    step = pl.program_id(0)

    @pl.when(step == 0)
    def _():
        cls_acc[...] = hs_ref[:, 0, :]                       # CLS token lives in chunk 0
        sum_acc[...] = jnp.zeros_like(sum_acc)
        cnt_acc[...] = jnp.zeros_like(cnt_acc)

    hs = hs_ref[...]                                         # (B, Sc, H)
    m = mask_ref[...]                                        # (B, Sc)
    sum_acc[...] += jnp.sum(hs * m[:, :, None], axis=1)
    cnt_acc[...] += jnp.sum(m, axis=1, keepdims=True)

    @pl.when(step == pl.num_programs(0) - 1)
    def _():
        mean_pooled = sum_acc[...] / jnp.maximum(cnt_acc[...], 1e-9)
        combined = (cls_acc[...] + mean_pooled) * 0.5        # (B, H)
        y = jnp.dot(combined.astype(_MXU_DTYPE), w_ref[...].astype(_MXU_DTYPE),
                    preferred_element_type=jnp.float32) + bias_ref[...]
        mu = jnp.mean(y, axis=-1, keepdims=True)
        var = jnp.mean((y - mu) ** 2, axis=-1, keepdims=True)
        y = (y - mu) * jax.lax.rsqrt(var + eps) * g_ref[...] + beta_ref[...]
        o_ref[...] = _gelu(y)                                # Dropout = identity (eval)


# ----------------------------------------------------------------------------- wrappers
_PARALLEL_1D = pltpu.CompilerParams(dimension_semantics=("parallel",))


def dense(x, w, b, activation=None, block_m=256):
    M, K = x.shape
    _, N = w.shape
    bm = min(block_m, M)
    return pl.pallas_call(
        functools.partial(_dense_kernel, activation=activation),
        out_shape=jax.ShapeDtypeStruct((M, N), jnp.float32),
        grid=(pl.cdiv(M, bm),),
        in_specs=[
            pl.BlockSpec((bm, K), lambda i: (i, 0)),
            pl.BlockSpec((K, N), lambda i: (0, 0)),
            pl.BlockSpec((1, N), lambda i: (0, 0)),
        ],
        out_specs=pl.BlockSpec((bm, N), lambda i: (i, 0)),
        compiler_params=_PARALLEL_1D,
    )(x, w, b.reshape(1, N))


def dense_residual_ln(x, residual, w, b, gamma, beta, eps, block_m=256):
    M, K = x.shape
    _, N = w.shape
    bm = min(block_m, M)
    return pl.pallas_call(
        functools.partial(_dense_res_ln_kernel, eps=eps),
        out_shape=jax.ShapeDtypeStruct((M, N), jnp.float32),
        grid=(pl.cdiv(M, bm),),
        in_specs=[
            pl.BlockSpec((bm, K), lambda i: (i, 0)),
            pl.BlockSpec((bm, N), lambda i: (i, 0)),
            pl.BlockSpec((K, N), lambda i: (0, 0)),
            pl.BlockSpec((1, N), lambda i: (0, 0)),
            pl.BlockSpec((1, N), lambda i: (0, 0)),
            pl.BlockSpec((1, N), lambda i: (0, 0)),
        ],
        out_specs=pl.BlockSpec((bm, N), lambda i: (i, 0)),
        compiler_params=_PARALLEL_1D,
    )(x, residual, w, b.reshape(1, N), gamma.reshape(1, N), beta.reshape(1, N))


def layer_norm(x, gamma, beta, eps, block_m=256):
    M, H = x.shape
    bm = min(block_m, M)
    return pl.pallas_call(
        functools.partial(_ln_kernel, eps=eps),
        out_shape=jax.ShapeDtypeStruct((M, H), jnp.float32),
        grid=(pl.cdiv(M, bm),),
        in_specs=[
            pl.BlockSpec((bm, H), lambda i: (i, 0)),
            pl.BlockSpec((1, H), lambda i: (0, 0)),
            pl.BlockSpec((1, H), lambda i: (0, 0)),
        ],
        out_specs=pl.BlockSpec((bm, H), lambda i: (i, 0)),
        compiler_params=_PARALLEL_1D,
    )(x, gamma.reshape(1, H), beta.reshape(1, H))


def attention(qkv, mask_bias, num_heads, scale):
    B, S, threeH = qkv.shape
    H = threeH // 3
    return pl.pallas_call(
        functools.partial(_attn_kernel, num_heads=num_heads, scale=scale),
        out_shape=jax.ShapeDtypeStruct((B, S, H), jnp.float32),
        grid=(B,),
        in_specs=[
            pl.BlockSpec((1, S, threeH), lambda b: (b, 0, 0)),
            pl.BlockSpec((1, S), lambda b: (b, 0)),
        ],
        out_specs=pl.BlockSpec((1, S, H), lambda b: (b, 0, 0)),
        compiler_params=_PARALLEL_1D,
    )(qkv, mask_bias)


def pool_project(hidden_states, attention_mask, w, b, gamma, beta, eps=1e-5, block_s=256):
    B, S, H = hidden_states.shape
    _, D = w.shape
    bs = _largest_divisor_leq(S, block_s)     # exact divisor: keeps accumulation clean
    return pl.pallas_call(
        functools.partial(_pool_proj_kernel, eps=eps),
        out_shape=jax.ShapeDtypeStruct((B, D), jnp.float32),
        grid=(S // bs,),
        in_specs=[
            pl.BlockSpec((B, bs, H), lambda s: (0, s, 0)),
            pl.BlockSpec((B, bs), lambda s: (0, s)),
            pl.BlockSpec((H, D), lambda s: (0, 0)),
            pl.BlockSpec((1, D), lambda s: (0, 0)),
            pl.BlockSpec((1, D), lambda s: (0, 0)),
            pl.BlockSpec((1, D), lambda s: (0, 0)),
        ],
        out_specs=pl.BlockSpec((B, D), lambda s: (0, 0)),
        scratch_shapes=[
            pltpu.VMEM((B, H), jnp.float32),   # cls accumulator
            pltpu.VMEM((B, H), jnp.float32),   # masked-sum accumulator
            pltpu.VMEM((B, 1), jnp.float32),   # mask-count accumulator
        ],
        compiler_params=pltpu.CompilerParams(dimension_semantics=("arbitrary",)),
    )(hidden_states, attention_mask, w, b.reshape(1, D), gamma.reshape(1, D),
      beta.reshape(1, D))


# ----------------------------------------------------------------------------- model glue
def roberta_embeddings(params, input_ids, pad_token_id=1):
    # RoBERTa position ids: positions count non-pad tokens, offset by padding_idx.
    # Embedding gathers stay in plain JAX (no clean Pallas equivalent needed here).
    not_pad = (input_ids != pad_token_id).astype(jnp.int32)
    position_ids = jnp.cumsum(not_pad, axis=1) * not_pad + pad_token_id
    word = jnp.take(params["word_emb"], input_ids, axis=0)
    pos = jnp.take(params["pos_emb"], position_ids, axis=0)
    tok = params["tok_emb"][0][None, None, :]      # token_type_ids == 0
    emb = word + pos + tok
    B, S, H = emb.shape
    # embedding dropout: eval-mode identity
    return layer_norm(emb.reshape(B * S, H), params["emb_ln_g"], params["emb_ln_b"],
                      eps=1e-12)


def encoder_layer(lp, x2, mask_bias, B, S, num_heads):
    H = x2.shape[1]
    d = H // num_heads
    scale = 1.0 / math.sqrt(d)

    qkv = dense(x2, lp["wqkv"], lp["bqkv"])                       # fused Q/K/V: (B*S, 3H)
    ctx = attention(qkv.reshape(B, S, 3 * H), mask_bias, num_heads, scale)   # (B, S, H)

    # attention output projection + residual + LayerNorm (fused epilogue)
    x2 = dense_residual_ln(ctx.reshape(B * S, H), x2, lp["wo"], lp["bo"],
                           lp["ln1_g"], lp["ln1_b"], eps=1e-12)

    inter = dense(x2, lp["wi"], lp["bi"], activation="gelu")      # FFN up + GELU
    # FFN down projection + residual + LayerNorm (fused epilogue)
    x2 = dense_residual_ln(inter, x2, lp["wo2"], lp["bo2"],
                           lp["ln2_g"], lp["ln2_b"], eps=1e-12)
    return x2


def mfbert_encoder_forward(params, inputs, num_heads):
    input_ids = inputs["input_ids"]
    attention_mask = inputs["attention_mask"].astype(jnp.float32)
    B, S = input_ids.shape

    x2 = roberta_embeddings(params, input_ids)                    # (B*S, H)
    H = x2.shape[-1]

    # HF extended attention mask: (1 - mask) * dtype_min, added to attention scores.
    # Kept as (B, S) -- broadcast over heads inside the attention kernel.
    mask_bias = (1.0 - attention_mask) * jnp.finfo(jnp.float32).min

    for lp in params["layers"]:
        x2 = encoder_layer(lp, x2, mask_bias, B, S, num_heads)

    hidden_states = x2.reshape(B, S, H)
    # CLS + masked-mean pooling, projection, LayerNorm, GELU (Dropout = identity, eval)
    return pool_project(hidden_states, attention_mask,
                        params["proj_w"], params["proj_b"],
                        params["proj_ln_g"], params["proj_ln_b"], eps=1e-5)


# ----------------------------------------------------------------------------- init
def init_params(key, vocab, max_pos, H, n_layers, n_heads, intermediate, out_dim):
    ks = iter(jax.random.split(key, 8 + 8 * n_layers))

    def w(shape, scale=0.02):
        return jax.random.normal(next(ks), shape, dtype=jnp.float32) * scale

    params = {
        "word_emb": w((vocab, H)),
        "pos_emb": w((max_pos, H)),
        "tok_emb": w((1, H)),
        "emb_ln_g": jnp.ones((H,), jnp.float32),
        "emb_ln_b": jnp.zeros((H,), jnp.float32),
        "proj_w": w((H, out_dim)),
        "proj_b": jnp.zeros((out_dim,), jnp.float32),
        "proj_ln_g": jnp.ones((out_dim,), jnp.float32),
        "proj_ln_b": jnp.zeros((out_dim,), jnp.float32),
        "layers": [],
    }
    for _ in range(n_layers):
        params["layers"].append({
            # fused QKV projection weight: [H, 3H] (Q | K | V along the output axis)
            "wqkv": w((H, 3 * H)), "bqkv": jnp.zeros((3 * H,), jnp.float32),
            "wo": w((H, H)), "bo": jnp.zeros((H,), jnp.float32),
            "ln1_g": jnp.ones((H,), jnp.float32), "ln1_b": jnp.zeros((H,), jnp.float32),
            "wi": w((H, intermediate)), "bi": jnp.zeros((intermediate,), jnp.float32),
            "wo2": w((intermediate, H)), "bo2": jnp.zeros((H,), jnp.float32),
            "ln2_g": jnp.ones((H,), jnp.float32), "ln2_b": jnp.zeros((H,), jnp.float32),
        })
    return params


# ----------------------------------------------------------------------------- main
if __name__ == "__main__":
    # Small synthetic RoBERTa config (structure mirrors
    # RobertaConfig(50265, 768, 6, 12, 3072) + Linear/LayerNorm/GELU projection head):
    VOCAB, MAX_POS = 100, 16
    HIDDEN, N_LAYERS, N_HEADS, INTERMEDIATE = 64, 2, 4, 128
    OUT_DIM = 32                         # hidden_dim of the projection head
    B, S = 2, 8
    PAD_ID = 1

    root = jax.random.PRNGKey(0)
    k_param, k_ids = jax.random.split(root)
    params = init_params(k_param, VOCAB, MAX_POS, HIDDEN, N_LAYERS, N_HEADS,
                         INTERMEDIATE, OUT_DIM)

    input_ids = jax.random.randint(k_ids, (B, S), 3, VOCAB, dtype=jnp.int32)
    attention_mask = jnp.ones((B, S), jnp.float32)
    # make the 2nd sequence padded in its last two positions
    attention_mask = attention_mask.at[1, -2:].set(0.0)
    input_ids = input_ids.at[1, -2:].set(PAD_ID)

    inputs = {"input_ids": input_ids, "attention_mask": attention_mask}

    out = mfbert_encoder_forward(params, inputs, N_HEADS)
    out = jax.block_until_ready(out)

    assert out.shape == (B, OUT_DIM), out.shape
    assert bool(jnp.all(jnp.isfinite(out)))
    print("KERNEL_OK")
</pallas_src>

<mosaic_0001>
module attributes {stable_mosaic.version = 11 : i64} {
  func.func @_ln_kernel(%arg0: i32, %arg1: memref<16x64xf32, #tpu.memory_space<vmem>>, %arg2: memref<1x64xf32, #tpu.memory_space<vmem>>, %arg3: memref<1x64xf32, #tpu.memory_space<vmem>>, %arg4: memref<16x64xf32, #tpu.memory_space<vmem>>) attributes {dimension_semantics = [#tpu.dimension_semantics<parallel>], iteration_bounds = array<i64: 1>, scalar_prefetch = 0 : i64, scratch_operands = 0 : i64, tpu.core_type = #tpu.core_type<tc>, window_params = [{transform_indices = @transform_0, window_bounds = array<i64: 16, 64>}, {pipeline_mode = #tpu.pipeline_mode<synchronous>, transform_indices = @transform_1, window_bounds = array<i64: 1, 64>}, {pipeline_mode = #tpu.pipeline_mode<synchronous>, transform_indices = @transform_2, window_bounds = array<i64: 1, 64>}, {transform_indices = @transform_3, window_bounds = array<i64: 16, 64>}]} {
    %c0 = arith.constant 0 : index
    %c0_0 = arith.constant 0 : index
    %0 = vector.load %arg1[%c0, %c0_0] : memref<16x64xf32, #tpu.memory_space<vmem>>, vector<16x64xf32>
    %cst = arith.constant dense<0.000000e+00> : vector<16xf32>
    %1 = vector.multi_reduction <add>, %0, %cst [1] : vector<16x64xf32> to vector<16xf32>
    %2 = vector.shape_cast %1 : vector<16xf32> to vector<16x1xf32>
    %cst_1 = arith.constant 6.400000e+01 : f32
    %3 = vector.broadcast %cst_1 : f32 to vector<16x1xf32>
    %4 = arith.divf %2, %3 : vector<16x1xf32>
    %5 = vector.broadcast %4 : vector<16x1xf32> to vector<16x64xf32>
    %6 = arith.subf %0, %5 : vector<16x64xf32>
    %7 = arith.mulf %6, %6 : vector<16x64xf32>
    %cst_2 = arith.constant dense<0.000000e+00> : vector<16xf32>
    %8 = vector.multi_reduction <add>, %7, %cst_2 [1] : vector<16x64xf32> to vector<16xf32>
    %9 = vector.shape_cast %8 : vector<16xf32> to vector<16x1xf32>
    %cst_3 = arith.constant 6.400000e+01 : f32
    %10 = vector.broadcast %cst_3 : f32 to vector<16x1xf32>
    %11 = arith.divf %9, %10 : vector<16x1xf32>
    %12 = vector.broadcast %4 : vector<16x1xf32> to vector<16x64xf32>
    %13 = arith.subf %0, %12 : vector<16x64xf32>
    %cst_4 = arith.constant 9.99999996E-13 : f32
    %14 = vector.broadcast %cst_4 : f32 to vector<16x1xf32>
    %15 = arith.addf %11, %14 : vector<16x1xf32>
    %16 = math.rsqrt %15 : vector<16x1xf32>
    %17 = vector.broadcast %16 : vector<16x1xf32> to vector<16x64xf32>
    %18 = arith.mulf %13, %17 : vector<16x64xf32>
    %c0_5 = arith.constant 0 : index
    %c0_6 = arith.constant 0 : index
    %19 = vector.load %arg2[%c0_5, %c0_6] : memref<1x64xf32, #tpu.memory_space<vmem>>, vector<1x64xf32>
    %20 = vector.broadcast %19 : vector<1x64xf32> to vector<16x64xf32>
    %21 = arith.mulf %18, %20 : vector<16x64xf32>
    %c0_7 = arith.constant 0 : index
    %c0_8 = arith.constant 0 : index
    %22 = vector.load %arg3[%c0_7, %c0_8] : memref<1x64xf32, #tpu.memory_space<vmem>>, vector<1x64xf32>
    %23 = vector.broadcast %22 : vector<1x64xf32> to vector<16x64xf32>
    %24 = arith.addf %21, %23 : vector<16x64xf32>
    %c0_9 = arith.constant 0 : index
    %c0_10 = arith.constant 0 : index
    %25 = vector.load %arg4[%c0_9, %c0_10] : memref<16x64xf32, #tpu.memory_space<vmem>>, vector<16x64xf32>
    tpu.vector_store %arg4[%c0_9, %c0_10], %24 {strides = array<i32>} : memref<16x64xf32, #tpu.memory_space<vmem>>, vector<16x64xf32>,
    return
  }
  func.func @transform_0(%arg0: i32) -> (i32, i32) {
    %c0_i32 = arith.constant 0 : i32
    %c0_i32_0 = arith.constant 0 : i32
    return %arg0, %c0_i32 : i32, i32
  }
  func.func @transform_1(%arg0: i32) -> (i32, i32) {
    %c0_i32 = arith.constant 0 : i32
    %c0_i32_0 = arith.constant 0 : i32
    %c0_i32_1 = arith.constant 0 : i32
    return %c0_i32, %c0_i32_0 : i32, i32
  }
  func.func @transform_2(%arg0: i32) -> (i32, i32) {
    %c0_i32 = arith.constant 0 : i32
    %c0_i32_0 = arith.constant 0 : i32
    %c0_i32_1 = arith.constant 0 : i32
    return %c0_i32, %c0_i32_0 : i32, i32
  }
  func.func @transform_3(%arg0: i32) -> (i32, i32) {
    %c0_i32 = arith.constant 0 : i32
    %c0_i32_0 = arith.constant 0 : i32
    return %arg0, %c0_i32 : i32, i32
  }
}

</mosaic_0001>

<bundles_post_ra>
// kernel: tpu_custom_call.1
= control target key start
LH: loop header
LB: loop body
LE: loop exit
PB: predicated region body
PF: predicated region fallthrough
CT: control target
= control target key end

     0   :  { %8 = vsyncpa [#allocation3], 0  ;;  %s220_s0 = inlined_call_operand.hbm [shape: f32[16,64], index: 0, kind: input, shape index: {}]   ;;  %s221_s1 = inlined_call_operand.vmem [shape: f32[1,64], index: 1, kind: input, shape index: {}]   ;;  %s222_s2 = inlined_call_operand.vmem [shape: f32[1,64], index: 2, kind: input, shape index: {}]   ;;  %s223_s3 = inlined_call_operand.hbm [shape: f32[16,64], index: 3, kind: output, shape index: {}]  }
   0x1   :  { %9 = vsyncpa [#allocation4], 0  ;;  %s154_s12 = smov [#allocation2]   ;;  %s106_s16 = scalar_lea.hbm %s220_s0, 256 }
   0x2   :  { %s15_s13 = sshll.u32 %s154_s12, 4  ;;  %p107_p0 = scmp.ne.s32.totalorder %s220_s0, %s106_s16  ;;  %s16_s13 = int_to_ptr.vmem [resolvable:$true] %s15_s13 }
   0x3   :  { %p110_p1 = scmp.lt.u32.totalorder %s106_s16, %s220_s0 }
   0x5   :  { %p112_p2 = pnand %p110_p1, %p107_p0 }
   0x7   :  { %115 = shalt.err (!%p112_p2)
}
   0x8   :  { %s116_s21 = scalar_lea.vmem %s16_s13, 256  ;;  %p121_p4 = scmp.lt.s32.totalorder %s16_s13, %s16_s13 }
   0x9   :  { %p117_p3 = scmp.ne.s32.totalorder %s16_s13, %s116_s21  ;;  %p122_p5 = scmp.lt.s32.totalorder %s116_s21, %s116_s21 }
   0xb   :  { %p123_p6 = por %p122_p5, %p121_p4 }
   0xd   :  { %p124_p7 = pnand %p123_p6, %p117_p3 }
   0xf   :  { %127 = shalt.err (!%p124_p7)
}
  0x10   :  { %s155_s22 = smov 128   ;;  %s156_s23 = smov 8  }
  0x11   :  { %21 = dma.hbm_to_vmem [thread:$0]  %s220_s0, 256, %s16_s13, [#allocation3], %s155_s22, %s155_s22, %s156_s23  }
  0x12   :  { %150 = dma.done.wait [#allocation3], 256  }
  0x13   :  { %151 = vsyncadd [#allocation3], 4294967040  ;;  %vm31_vm0 = vcmask 523264   ;;  %v29_v0 = vld [vmem:[#allocation2] sm:$0xff]  ;;  %v30_v1 = vld [vmem:[#allocation2 + $0x8] sm:$0xff]  ;;  %s157_s29 = smov [#allocation5]  }
  0x14   :  { %v32_v2 = vsel %vm31_vm0, %v29_v0, 0.0  ;;  %v35_v3 = vsel %vm31_vm0, %v30_v1, 0.0  ;;  %v96_v21 = vld [vmem:[%s221_s1] ss:$0 sm:$0xff]  ;;  %s84_s30 = sshll.u32 %s157_s29, 4  ;;  %s85_s30 = int_to_ptr.vmem [resolvable:$true] %s84_s30 }
  0x15   :  { %33 = vadd.xlane.f32.xlu0 %v32_v2  ;;  %v97_v23 = vld [vmem:[%s222_s2] ss:$0 sm:$0xff]  ;;  %s128_s4 = scalar_lea.vmem %s85_s30, 256  ;;  %p133_p9 = scmp.lt.s32.totalorder %s85_s30, %s85_s30 }
  0x16   :  { %p129_p8 = scmp.ne.s32.totalorder %s85_s30, %s128_s4  ;;  %p134_p10 = scmp.lt.s32.totalorder %s128_s4, %s128_s4 }
  0x18   :  { %p135_p11 = por %p134_p10, %p133_p9 }
  0x19   :  { %36 = vadd.xlane.f32.xlu0 %v35_v3 }
  0x1a   :  { %p136_p12 = pnand %p135_p11, %p129_p8 }
  0xa2   :  { %v34_v4 = vpop.xlane.xlu0 %33 }
  0xa3   :  { %v39_v5 = vmul.f32 0.015625, %v34_v4 }
  0xa5   :  { %v41_v6 = vsub.f32 %v29_v0, %v39_v5 }
  0xa6   :  { %v37_v7 = vpop.xlane.xlu0 %36 }
  0xa7   :  { %v40_v8 = vmul.f32 0.015625, %v37_v7  ;;  %v43_v9 = vmul.f32 %v41_v6, %v41_v6 }
  0xa9   :  { %v42_v10 = vsub.f32 %v30_v1, %v40_v8  ;;  %v45_v11 = vsel %vm31_vm0, %v43_v9, 0.0 }
  0xaa   :  { %46 = vadd.xlane.f32.xlu1 %v45_v11 }
  0xab   :  { %v44_v12 = vmul.f32 %v42_v10, %v42_v10 }
  0xad   :  { %v48_v13 = vsel %vm31_vm0, %v44_v12, 0.0 }
  0xae   :  { %49 = vadd.xlane.f32.xlu1 %v48_v13 }
 0x137   :  { %v47_v14 = vpop.xlane.xlu1 %46 }
 0x138   :  { %v51_v15 = vmul.f32 0.015625, %v47_v14 }
 0x13a   :  { %v53_v16 = vadd.f32 1e-12, %v51_v15 }
 0x13b   :  { %v50_v17 = vpop.xlane.xlu1 %49 }
 0x13c   :  { %102 = vrsqrt.f32 %v53_v16  ;;  %v52_v18 = vmul.f32 0.015625, %v50_v17 }
 0x13e   :  { %v54_v19 = vadd.f32 1e-12, %v52_v18 }
 0x140   :  { %104 = vrsqrt.f32 %v54_v19 }
 0x146   :  { %v103_v20 = vpop.eup %102 }
 0x147   :  { %v57_v22 = vmul.f32 %v103_v20, %v41_v6 }
 0x149   :  { %v66_v24 = vmul.f32 %v96_v21, %v57_v22 }
 0x14a   :  { %v105_v25 = vpop.eup %104 }
 0x14b   :  { %v58_v26 = vmul.f32 %v105_v25, %v42_v10  ;;  %v75_v27 = vadd.f32 %v97_v23, %v66_v24 }
 0x14d   :  { %v67_v28 = vmul.f32 %v96_v21, %v58_v26  ;;  %77 = vst.msk [vmem:[#allocation5] sm:$0xff] %vm31_vm0, %v75_v27 }
 0x14f   :  { %v76_v29 = vadd.f32 %v97_v23, %v67_v28 }
 0x151   :  { %78 = vst.msk [vmem:[#allocation5 + $0x8] sm:$0xff] %vm31_vm0, %v76_v29 }
 0x152   :  { %139 = shalt.err (!%p136_p12)
}
 0x153   :  { %s140_s5 = scalar_lea.hbm %s223_s3, 256 }
 0x154   :  { %p141_p13 = scmp.ne.s32.totalorder %s223_s3, %s140_s5  ;;  %p144_p0 = scmp.lt.u32.totalorder %s140_s5, %s223_s3 }
 0x156   :  { %p146_p1 = pnand %p144_p0, %p141_p13 }
 0x158   :  { %149 = shalt.err (!%p146_p1)
}
 0x159   :  { %90 = dma.vmem_to_hbm [thread:$0]  %s85_s30, 256, %s223_s3, [#allocation4], %s155_s22, %s155_s22, %s156_s23  }
 0x15a   :  { %152 = dma.done.wait [#allocation4], 256  }
 0x15b   :  { %153 = vsyncadd [#allocation4], 4294967040 }
 0x15c   :  { %94 = vsyncpa [#allocation3], 1 }
 0x15d   :  { %95 = vsyncpa [#allocation4], 1 }

</bundles_post_ra>
